<compile_context>
chip_gen: v6e
topology: v6e:2x2x1
jax: 0.10.0
libtpu: 0.0.40
codegen_flags: <defaults>
</compile_context>

<pallas_src>
import functools

import jax
import jax.numpy as jnp
from jax.experimental import pallas as pl
from jax.experimental.pallas import tpu as pltpu


def _round_up(x, m):
    return ((x + m - 1) // m) * m


def _component_head_kernel(pooled_ref, w1_ref, b1_ref, w2_ref, b2_ref, w3_ref, b3_ref,
                           scores_ref, types_ref):
    # pooled_ref: [TILE_N, C] f32 -- spatial mean already computed (in f32) by XLA.
    pooled = pooled_ref[...]

    # --- Linear(C, hidden) + ReLU   (Dropout is identity in eval mode) ---
    h1 = jnp.dot(pooled.astype(jnp.bfloat16), w1_ref[...],
                 preferred_element_type=jnp.float32)
    h1 = jnp.maximum(h1 + b1_ref[...], 0.0)                       # [TILE_N, H] f32

    # --- Linear(hidden, hidden) + ReLU ---
    h2 = jnp.dot(h1.astype(jnp.bfloat16), w2_ref[...],
                 preferred_element_type=jnp.float32)
    h2 = jnp.maximum(h2 + b2_ref[...], 0.0)                       # [TILE_N, H] f32

    # --- Linear(hidden, num_classes)  (class dim padded to 128; pad bias = -1e30) ---
    scores = jnp.dot(h2.astype(jnp.bfloat16), w3_ref[...],
                     preferred_element_type=jnp.float32)
    scores = scores + b3_ref[...]                                 # [TILE_N, CLS_PAD] f32
    scores_ref[...] = scores                                      # lane-dense store

    # --- torch.argmax(scores, dim=1) (first occurrence of max) ---
    cls_pad = scores.shape[1]
    col_ids = jax.lax.broadcasted_iota(jnp.int32, scores.shape, 1)
    max_val = jnp.max(scores, axis=1, keepdims=True)
    candidate = jnp.where(scores == max_val, col_ids, jnp.int32(cls_pad))
    types_ref[...] = jnp.min(candidate, axis=1, keepdims=True)    # [TILE_N, 1] i32, 4 B/row


@functools.partial(jax.jit, static_argnames=("tile_n",))
def component_head(roi_features, w1, b1, w2, b2, w3, b3, *, tile_n=256):
    """roi_features: [N, C, H, W] float32 (NCHW, as produced by box_roi_pool).
    Weights stored [in, out] (transpose of PyTorch nn.Linear.weight).
    Returns (component_scores [N, num_classes] f32, component_types [N] i32)."""
    n, c, _, _ = roi_features.shape
    hidden = w1.shape[1]
    num_classes = w3.shape[1]

    # Spatial mean in f32, fused by XLA into a single near-roofline read of the NCHW
    # feature map (review option (a)): no transpose / cast / pad copy passes of the stream.
    pooled = jnp.mean(roi_features, axis=(2, 3))                  # [N, C] f32

    # Tile the ROI axis; N is NOT padded -- the ragged trailing block is read-padded /
    # write-masked by Pallas automatically.
    tile = min(tile_n, _round_up(n, 8))
    n_tiles = pl.cdiv(n, tile)

    # Pad the class dim to 128 lanes; padded logits get bias -1e30 so argmax ignores them.
    cls_pad = _round_up(num_classes, 128)
    w1b = w1.astype(jnp.bfloat16)
    w2b = w2.astype(jnp.bfloat16)
    w3b = jnp.pad(w3, ((0, 0), (0, cls_pad - num_classes))).astype(jnp.bfloat16)
    b1r = b1.reshape(1, hidden).astype(jnp.float32)
    b2r = b2.reshape(1, hidden).astype(jnp.float32)
    b3r = jnp.pad(b3.astype(jnp.float32), (0, cls_pad - num_classes),
                  constant_values=-1e30).reshape(1, cls_pad)

    const = lambda shape: pl.BlockSpec(shape, lambda i: tuple(0 for _ in shape))

    mlp_flops = 2 * n * (c * hidden + hidden * hidden + hidden * cls_pad)
    bytes_accessed = (n * c * 4                                   # pooled f32 stream
                      + (c * hidden + hidden * hidden + hidden * cls_pad) * 2
                      + (2 * hidden + cls_pad) * 4
                      + n * cls_pad * 4 + n * 4)                  # outputs

    scores, types = pl.pallas_call(
        _component_head_kernel,
        out_shape=(
            jax.ShapeDtypeStruct((n, cls_pad), jnp.float32),
            jax.ShapeDtypeStruct((n, 1), jnp.int32),
        ),
        grid=(n_tiles,),
        in_specs=[
            pl.BlockSpec((tile, c), lambda i: (i, 0)),            # streamed / pipelined
            const((c, hidden)), const((1, hidden)),               # VMEM-resident weights
            const((hidden, hidden)), const((1, hidden)),
            const((hidden, cls_pad)), const((1, cls_pad)),
        ],
        out_specs=(
            pl.BlockSpec((tile, cls_pad), lambda i: (i, 0)),
            pl.BlockSpec((tile, 1), lambda i: (i, 0)),
        ),
        compiler_params=pltpu.CompilerParams(
            dimension_semantics=("parallel",)),
        cost_estimate=pl.CostEstimate(flops=mlp_flops, transcendentals=0,
                                      bytes_accessed=bytes_accessed),
    )(pooled, w1b, b1r, w2b, b2r, w3b, b3r)

    return scores[:, :num_classes], types[:, 0]


def init_params(key, in_features, hidden_dim, num_classes):
    """Deterministic synthetic init of the component_classifier weights.
    Weights are stored [in, out] (transpose of PyTorch nn.Linear.weight)."""
    ks = jax.random.split(key, 6)
    s1 = 1.0 / jnp.sqrt(in_features)
    s2 = 1.0 / jnp.sqrt(hidden_dim)
    w1 = jax.random.uniform(ks[0], (in_features, hidden_dim), jnp.float32, -s1, s1)
    b1 = jax.random.uniform(ks[1], (hidden_dim,), jnp.float32, -s1, s1)
    w2 = jax.random.uniform(ks[2], (hidden_dim, hidden_dim), jnp.float32, -s2, s2)
    b2 = jax.random.uniform(ks[3], (hidden_dim,), jnp.float32, -s2, s2)
    w3 = jax.random.uniform(ks[4], (hidden_dim, num_classes), jnp.float32, -s2, s2)
    b3 = jax.random.uniform(ks[5], (num_classes,), jnp.float32, -s2, s2)
    return w1, b1, w2, b2, w3, b3


if __name__ == "__main__":
    # Small demo shapes: 20 ROIs of 7x7 RoI-pooled features with C=128 channels,
    # hidden_dim=128, num_classes=8. tile_n=8 exercises a multi-step grid with a ragged
    # (write-masked) trailing block -- no N padding anywhere.
    num_rois, in_features, roi_h, roi_w = 20, 128, 7, 7
    hidden_dim, num_classes = 128, 8

    key = jax.random.PRNGKey(0)
    k_feat, k_param = jax.random.split(key)
    roi_features = jax.random.normal(
        k_feat, (num_rois, in_features, roi_h, roi_w), dtype=jnp.float32)
    params = init_params(k_param, in_features, hidden_dim, num_classes)

    component_scores, component_types = component_head(roi_features, *params, tile_n=8)
    jax.block_until_ready((component_scores, component_types))

    # Reference in plain JAX: f32 pooling, bf16 MXU matmuls with f32 accumulation.
    w1, b1, w2, b2, w3, b3 = params
    pooled = roi_features.mean(axis=(2, 3))
    h = jnp.dot(pooled.astype(jnp.bfloat16), w1.astype(jnp.bfloat16),
                preferred_element_type=jnp.float32)
    h = jnp.maximum(h + b1, 0.0)
    h = jnp.dot(h.astype(jnp.bfloat16), w2.astype(jnp.bfloat16),
                preferred_element_type=jnp.float32)
    h = jnp.maximum(h + b2, 0.0)
    ref_scores = jnp.dot(h.astype(jnp.bfloat16), w3.astype(jnp.bfloat16),
                         preferred_element_type=jnp.float32) + b3
    ref_types = jnp.argmax(ref_scores, axis=1).astype(jnp.int32)

    assert component_scores.shape == (num_rois, num_classes)
    assert component_types.shape == (num_rois,)
    assert jnp.allclose(component_scores, ref_scores, atol=2e-2, rtol=2e-2)
    # In-kernel argmax must match argmax of the produced scores, and of the reference.
    assert jnp.array_equal(component_types,
                           jnp.argmax(component_scores, axis=1).astype(jnp.int32))
    assert jnp.array_equal(component_types, ref_types)

    print("KERNEL_OK")
</pallas_src>

<mosaic_0001>
module attributes {stable_mosaic.version = 11 : i64} {
  func.func @_component_head_kernel(%arg0: i32, %arg1: memref<8x128xf32, #tpu.memory_space<vmem>>, %arg2: memref<128x128xbf16, #tpu.memory_space<vmem>>, %arg3: memref<1x128xf32, #tpu.memory_space<vmem>>, %arg4: memref<128x128xbf16, #tpu.memory_space<vmem>>, %arg5: memref<1x128xf32, #tpu.memory_space<vmem>>, %arg6: memref<128x128xbf16, #tpu.memory_space<vmem>>, %arg7: memref<1x128xf32, #tpu.memory_space<vmem>>, %arg8: memref<8x128xf32, #tpu.memory_space<vmem>>, %arg9: memref<8x1xi32, #tpu.memory_space<vmem>>) attributes {dimension_semantics = [#tpu.dimension_semantics<parallel>], iteration_bounds = array<i64: 3>, scalar_prefetch = 0 : i64, scratch_operands = 0 : i64, tpu.core_type = #tpu.core_type<tc>, window_params = [{transform_indices = @transform_0, window_bounds = array<i64: 8, 128>}, {pipeline_mode = #tpu.pipeline_mode<synchronous>, transform_indices = @transform_1, window_bounds = array<i64: 128, 128>}, {pipeline_mode = #tpu.pipeline_mode<synchronous>, transform_indices = @transform_2, window_bounds = array<i64: 1, 128>}, {pipeline_mode = #tpu.pipeline_mode<synchronous>, transform_indices = @transform_3, window_bounds = array<i64: 128, 128>}, {pipeline_mode = #tpu.pipeline_mode<synchronous>, transform_indices = @transform_4, window_bounds = array<i64: 1, 128>}, {pipeline_mode = #tpu.pipeline_mode<synchronous>, transform_indices = @transform_5, window_bounds = array<i64: 128, 128>}, {pipeline_mode = #tpu.pipeline_mode<synchronous>, transform_indices = @transform_6, window_bounds = array<i64: 1, 128>}, {transform_indices = @transform_7, window_bounds = array<i64: 8, 128>}, {transform_indices = @transform_8, window_bounds = array<i64: 8, 1>}]} {
    %c0 = arith.constant 0 : index
    %c0_0 = arith.constant 0 : index
    %0 = vector.load %arg1[%c0, %c0_0] : memref<8x128xf32, #tpu.memory_space<vmem>>, vector<8x128xf32>
    %1 = arith.truncf %0 : vector<8x128xf32> to vector<8x128xbf16>
    %c0_1 = arith.constant 0 : index
    %c0_2 = arith.constant 0 : index
    %2 = vector.load %arg2[%c0_1, %c0_2] : memref<128x128xbf16, #tpu.memory_space<vmem>>, vector<128x128xbf16>
    %cst = arith.constant dense<0.000000e+00> : vector<8x128xf32>
    %3 = tpu.matmul %1, %2, %cst {dimension_numbers = #tpu.dot_dimension_numbers<[1], [0], [0], [1], [0, 0, 1, 1], [], []>} : vector<8x128xbf16>, vector<128x128xbf16>, vector<8x128xf32> -> vector<8x128xf32>
    %c0_3 = arith.constant 0 : index
    %c0_4 = arith.constant 0 : index
    %4 = vector.load %arg3[%c0_3, %c0_4] : memref<1x128xf32, #tpu.memory_space<vmem>>, vector<1x128xf32>
    %5 = vector.broadcast %4 : vector<1x128xf32> to vector<8x128xf32>
    %6 = arith.addf %3, %5 : vector<8x128xf32>
    %cst_5 = arith.constant 0.000000e+00 : f32
    %7 = vector.broadcast %cst_5 : f32 to vector<8x128xf32>
    %8 = arith.maximumf %6, %7 : vector<8x128xf32>
    %9 = arith.truncf %8 : vector<8x128xf32> to vector<8x128xbf16>
    %c0_6 = arith.constant 0 : index
    %c0_7 = arith.constant 0 : index
    %10 = vector.load %arg4[%c0_6, %c0_7] : memref<128x128xbf16, #tpu.memory_space<vmem>>, vector<128x128xbf16>
    %cst_8 = arith.constant dense<0.000000e+00> : vector<8x128xf32>
    %11 = tpu.matmul %9, %10, %cst_8 {dimension_numbers = #tpu.dot_dimension_numbers<[1], [0], [0], [1], [0, 0, 1, 1], [], []>} : vector<8x128xbf16>, vector<128x128xbf16>, vector<8x128xf32> -> vector<8x128xf32>
    %c0_9 = arith.constant 0 : index
    %c0_10 = arith.constant 0 : index
    %12 = vector.load %arg5[%c0_9, %c0_10] : memref<1x128xf32, #tpu.memory_space<vmem>>, vector<1x128xf32>
    %13 = vector.broadcast %12 : vector<1x128xf32> to vector<8x128xf32>
    %14 = arith.addf %11, %13 : vector<8x128xf32>
    %cst_11 = arith.constant 0.000000e+00 : f32
    %15 = vector.broadcast %cst_11 : f32 to vector<8x128xf32>
    %16 = arith.maximumf %14, %15 : vector<8x128xf32>
    %17 = arith.truncf %16 : vector<8x128xf32> to vector<8x128xbf16>
    %c0_12 = arith.constant 0 : index
    %c0_13 = arith.constant 0 : index
    %18 = vector.load %arg6[%c0_12, %c0_13] : memref<128x128xbf16, #tpu.memory_space<vmem>>, vector<128x128xbf16>
    %cst_14 = arith.constant dense<0.000000e+00> : vector<8x128xf32>
    %19 = tpu.matmul %17, %18, %cst_14 {dimension_numbers = #tpu.dot_dimension_numbers<[1], [0], [0], [1], [0, 0, 1, 1], [], []>} : vector<8x128xbf16>, vector<128x128xbf16>, vector<8x128xf32> -> vector<8x128xf32>
    %c0_15 = arith.constant 0 : index
    %c0_16 = arith.constant 0 : index
    %20 = vector.load %arg7[%c0_15, %c0_16] : memref<1x128xf32, #tpu.memory_space<vmem>>, vector<1x128xf32>
    %21 = vector.broadcast %20 : vector<1x128xf32> to vector<8x128xf32>
    %22 = arith.addf %19, %21 : vector<8x128xf32>
    %c0_17 = arith.constant 0 : index
    %c0_18 = arith.constant 0 : index
    %23 = vector.load %arg8[%c0_17, %c0_18] : memref<8x128xf32, #tpu.memory_space<vmem>>, vector<8x128xf32>
    tpu.vector_store %arg8[%c0_17, %c0_18], %22 {strides = array<i32>} : memref<8x128xf32, #tpu.memory_space<vmem>>, vector<8x128xf32>,
    %24 = tpu.iota {dimensions = array<i32: 1>} : vector<8x128xi32>
    %cst_19 = arith.constant dense<0xFF800000> : vector<8xf32>
    %25 = vector.multi_reduction <maximumf>, %22, %cst_19 [1] : vector<8x128xf32> to vector<8xf32>
    %26 = vector.shape_cast %25 : vector<8xf32> to vector<8x1xf32>
    %27 = vector.broadcast %26 : vector<8x1xf32> to vector<8x128xf32>
    %28 = arith.cmpf oeq, %22, %27 : vector<8x128xf32>
    %c128_i32 = arith.constant 128 : i32
    %29 = vector.broadcast %c128_i32 : i32 to vector<8x128xi32>
    %30 = arith.select %28, %24, %29 : vector<8x128xi1>, vector<8x128xi32>
    %cst_20 = arith.constant dense<2147483647> : vector<8xi32>
    %31 = vector.multi_reduction <minsi>, %30, %cst_20 [1] : vector<8x128xi32> to vector<8xi32>
    %32 = vector.shape_cast %31 : vector<8xi32> to vector<8x1xi32>
    %c0_21 = arith.constant 0 : index
    %c0_22 = arith.constant 0 : index
    %33 = vector.load %arg9[%c0_21, %c0_22] : memref<8x1xi32, #tpu.memory_space<vmem>>, vector<8x1xi32>
    tpu.vector_store %arg9[%c0_21, %c0_22], %32 {strides = array<i32>} : memref<8x1xi32, #tpu.memory_space<vmem>>, vector<8x1xi32>,
    return
  }
  func.func @transform_0(%arg0: i32) -> (i32, i32) {
    %c0_i32 = arith.constant 0 : i32
    %c0_i32_0 = arith.constant 0 : i32
    return %arg0, %c0_i32 : i32, i32
  }
  func.func @transform_1(%arg0: i32) -> (i32, i32) {
    %c0_i32 = arith.constant 0 : i32
    %c0_i32_0 = arith.constant 0 : i32
    %c0_i32_1 = arith.constant 0 : i32
    return %c0_i32, %c0_i32_0 : i32, i32
  }
  func.func @transform_2(%arg0: i32) -> (i32, i32) {
    %c0_i32 = arith.constant 0 : i32
    %c0_i32_0 = arith.constant 0 : i32
    %c0_i32_1 = arith.constant 0 : i32
    return %c0_i32, %c0_i32_0 : i32, i32
  }
  func.func @transform_3(%arg0: i32) -> (i32, i32) {
    %c0_i32 = arith.constant 0 : i32
    %c0_i32_0 = arith.constant 0 : i32
    %c0_i32_1 = arith.constant 0 : i32
    return %c0_i32, %c0_i32_0 : i32, i32
  }
  func.func @transform_4(%arg0: i32) -> (i32, i32) {
    %c0_i32 = arith.constant 0 : i32
    %c0_i32_0 = arith.constant 0 : i32
    %c0_i32_1 = arith.constant 0 : i32
    return %c0_i32, %c0_i32_0 : i32, i32
  }
  func.func @transform_5(%arg0: i32) -> (i32, i32) {
    %c0_i32 = arith.constant 0 : i32
    %c0_i32_0 = arith.constant 0 : i32
    %c0_i32_1 = arith.constant 0 : i32
    return %c0_i32, %c0_i32_0 : i32, i32
  }
  func.func @transform_6(%arg0: i32) -> (i32, i32) {
    %c0_i32 = arith.constant 0 : i32
    %c0_i32_0 = arith.constant 0 : i32
    %c0_i32_1 = arith.constant 0 : i32
    return %c0_i32, %c0_i32_0 : i32, i32
  }
  func.func @transform_7(%arg0: i32) -> (i32, i32) {
    %c0_i32 = arith.constant 0 : i32
    %c0_i32_0 = arith.constant 0 : i32
    return %arg0, %c0_i32 : i32, i32
  }
  func.func @transform_8(%arg0: i32) -> (i32, i32) {
    %c0_i32 = arith.constant 0 : i32
    %c0_i32_0 = arith.constant 0 : i32
    return %arg0, %c0_i32 : i32, i32
  }
}

</mosaic_0001>

<bundles_post_ra>
// kernel: component_head.1
= control target key start
LH: loop header
LB: loop body
LE: loop exit
PB: predicated region body
PF: predicated region fallthrough
CT: control target
= control target key end

     0   :  { %s972_s27 = smov 0   ;;  %s1108_s0 = inlined_call_operand.vmem [shape: f32[20,128], index: 0, kind: input, shape index: {}]   ;;  %s1109_s1 = inlined_call_operand.vmem [shape: bf16[128,128], index: 1, kind: input, shape index: {}]   ;;  %s1110_s2 = inlined_call_operand.vmem [shape: f32[1,128], index: 2, kind: input, shape index: {}]   ;;  %s1111_s3 = inlined_call_operand.vmem [shape: bf16[128,128], index: 3, kind: input, shape index: {}]   ;;  %s1112_s4 = inlined_call_operand.vmem [shape: f32[1,128], index: 4, kind: input, shape index: {}]   ;;  %s1113_s5 = inlined_call_operand.vmem [shape: bf16[128,128], index: 5, kind: input, shape index: {}]   ;;  %s1114_s6 = inlined_call_operand.vmem [shape: f32[1,128], index: 6, kind: input, shape index: {}]   ;;  %s1115_s7 = inlined_call_operand.vmem [shape: f32[20,128], index: 7, kind: output, shape index: {0}]   ;;  %s1116_s8 = inlined_call_operand.vmem [shape: s32[20,1], index: 8, kind: output, shape index: {1}]  }
   0x1 LB: > { %s759_s28 = sadd.s32 4294967295, %s923_s27   ;;  %p763_p0 = scmp.ge.s32.totalorder %s923_s27, 1  ;;  %s923_s27 = sphi %s972_s27, %s19_s27  }
   0x2   : > { %p264_p1 = scmp.lt.s32.totalorder %s923_s27, 4 }
   0x4   : > { %p265_p2 = pnand %p763_p0, %p264_p1 }
   0x5   : > { %p300_p3 = scmp.lt.s32.totalorder (!%p265_p2), %s759_s28, 2 }
   0x6   : > { %268 = sbr.rel (%p265_p2) target bundleno = 1064 (0x428), region = 48 }
   0xb   : > { %v893_v0 = vld [vmem:[%s1109_s1 + $0x38] sm:$0xff]   ;;  %v925_v1 = vmov 0.0   ;;  %v894_v2 = vld [vmem:[%s1109_s1 + $0x30] sm:$0xff]   ;;  %vm926_vm0 = vmmov 0   ;;  %v895_v3 = vld [vmem:[%s1109_s1 + $0x28] sm:$0xff]   ;;  %s1118_s28 = smov (!%p300_p3, %s759_s28), 2  ;;  %v653_v49 = vlaneseq }
   0xc   : > { %823 = vmatprep.subr.bf16.mxu0 %v925_v1  ;;  %843 = vmatprep.subr.bf16.mxu1 %v925_v1  ;;  %v901_v4 = vld [vmem:[%s1111_s3 + $0x38] sm:$0xff]   ;;  %v896_v5 = vld [vmem:[%s1109_s1 + $0x20] sm:$0xff]   ;;  %v902_v6 = vld [vmem:[%s1111_s3 + $0x30] sm:$0xff]   ;;  %s1011_s21 = sshll.u32 %s1118_s28, 3  ;;  %vm673_vm3 = vcmask 7168  }
   0xd   : > { %824 = vmatpush3.bf16.msra.mxu0 %v893_v0  ;;  %839 = vmatprep.mubr.msk.bf16.mxu0 %vm926_vm0, %v925_v1  ;;  %v897_v7 = vld [vmem:[%s1109_s1 + $0x18] sm:$0xff]   ;;  %v903_v8 = vld [vmem:[%s1111_s3 + $0x28] sm:$0xff]   ;;  %v898_v9 = vld [vmem:[%s1109_s1 + $0x10] sm:$0xff]   ;;  %s303_s11 = scalar_lea.vmem %s1108_s0, %s1011_s21  ;;  %s307_s29 = scalar_lea.vmem %s1115_s7, %s1011_s21  ;;  %v654_v50 = vand.u32 127, %v653_v49 }
   0xe   : > { %825 = vmatprep.subr.bf16.mxu0 %v925_v1  ;;  %859 = vmatprep.mubr.msk.bf16.mxu1 %vm926_vm0, %v925_v1  ;;  %v904_v10 = vld [vmem:[%s1111_s3 + $0x20] sm:$0xff]   ;;  %v899_v11 = vld [vmem:[%s1109_s1 + $0x8] sm:$0xff]   ;;  %v905_v12 = vld [vmem:[%s1111_s3 + $0x18] sm:$0xff]   ;;  %s311_s9 = scalar_lea.vmem %s1116_s8, %s1011_s21 }
   0xf   : > { %844 = vmatpush3.bf16.msra.mxu1 %v901_v4  ;;  %v900_v13 = vld [vmem:[%s1109_s1] sm:$0xff]   ;;  %v906_v15 = vld [vmem:[%s1111_s3 + $0x10] sm:$0xff]   ;;  %v907_v17 = vld [vmem:[%s1111_s3 + $0x8] sm:$0xff]  }
  0x10   : > { %845 = vmatprep.subr.bf16.mxu1 %v925_v1  ;;  %v313_v14 = vld [vmem:[%s303_s11] sm:$0xff]  ;;  %v909_v19 = vld [vmem:[%s1113_s5 + $0x38] sm:$0xff]   ;;  %v910_v20 = vld [vmem:[%s1113_s5 + $0x30] sm:$0xff]  }
  0x11   : > { %826 = vmatpush3.bf16.msra.mxu0 %v894_v2  ;;  %v314_v16 = vpack.c.bf16 %v313_v14, %v313_v14  ;;  %v908_v18 = vld [vmem:[%s1111_s3] sm:$0xff]   ;;  %v911_v21 = vld [vmem:[%s1113_s5 + $0x28] sm:$0xff]   ;;  %v913_v23 = vld [vmem:[%s1113_s5 + $0x18] sm:$0xff]  }
  0x12   : > { %827 = vmatprep.subr.bf16.mxu0 %v925_v1  ;;  %v912_v22 = vld [vmem:[%s1113_s5 + $0x20] sm:$0xff]   ;;  %v914_v24 = vld [vmem:[%s1113_s5 + $0x10] sm:$0xff]   ;;  %v915_v33 = vld [vmem:[%s1113_s5 + $0x8] sm:$0xff]  }
  0x13   : > { %846 = vmatpush3.bf16.msra.mxu1 %v902_v6  ;;  %v767_v25 = vld [vmem:[%s1110_s2] ss:$0 sm:$0xff] }
  0x14   : > { %847 = vmatprep.subr.bf16.mxu1 %v925_v1  ;;  %v916_v34 = vld [vmem:[%s1113_s5] sm:$0xff]  }
  0x15   : > { %828 = vmatpush3.bf16.msra.mxu0 %v895_v3  ;;  %v776_v35 = vld [vmem:[%s1112_s4] ss:$0 sm:$0xff] }
  0x16   : > { %829 = vmatprep.subr.bf16.mxu0 %v925_v1  ;;  %v785_v43 = vld [vmem:[%s1114_s6] ss:$0 sm:$0xff] }
  0x17   : > { %848 = vmatpush3.bf16.msra.mxu1 %v903_v8 }
  0x18   : > { %849 = vmatprep.subr.bf16.mxu1 %v925_v1 }
  0x19   : > { %830 = vmatpush3.bf16.msra.mxu0 %v896_v5 }
  0x1a   : > { %831 = vmatprep.subr.bf16.mxu0 %v925_v1 }
  0x1b   : > { %850 = vmatpush3.bf16.msra.mxu1 %v904_v10 }
  0x1c   : > { %851 = vmatprep.subr.bf16.mxu1 %v925_v1 }
  0x1d   : > { %832 = vmatpush3.bf16.msra.mxu0 %v897_v7 }
  0x1e   : > { %833 = vmatprep.subr.bf16.mxu0 %v925_v1 }
  0x1f   : > { %852 = vmatpush3.bf16.msra.mxu1 %v905_v12 }
  0x20   : > { %853 = vmatprep.subr.bf16.mxu1 %v925_v1 }
  0x21   : > { %834 = vmatpush3.bf16.msra.mxu0 %v898_v9 }
  0x22   : > { %835 = vmatprep.subr.bf16.mxu0 %v925_v1 }
  0x23   : > { %854 = vmatpush3.bf16.msra.mxu1 %v906_v15 }
  0x24   : > { %855 = vmatprep.subr.bf16.mxu1 %v925_v1 }
  0x25   : > { %836 = vmatpush3.bf16.msra.mxu0 %v899_v11 }
  0x26   : > { %837 = vmatprep.subr.bf16.mxu0 %v925_v1 }
  0x27   : > { %856 = vmatpush3.bf16.msra.mxu1 %v907_v17 }
  0x28   : > { %857 = vmatprep.subr.bf16.mxu1 %v925_v1 }
  0x29   : > { %838 = vmatpush3.bf16.msra.mxu0 %v900_v13 }
  0x2a   : > { %863 = vmatprep.subr.bf16.mxu0 %v925_v1 }
  0x2b   : > { %858 = vmatpush3.bf16.msra.mxu1 %v908_v18 }
  0x2c   : > { %840 = vmatmul.mubr.bf16.vlgmr.msra.gmra.mxu0 %v314_v16 }
  0x2d   : > { %879 = vmatprep.mubr.msk.bf16.mxu0 %vm926_vm0, %v925_v1  ;;  %864 = vmatpush3.bf16.msra.mxu0 %v909_v19 }
  0x2e   : > { %865 = vmatprep.subr.bf16.mxu0 %v925_v1 }
  0x31   : > { %866 = vmatpush3.bf16.msra.mxu0 %v910_v20 }
  0x32   : > { %867 = vmatprep.subr.bf16.mxu0 %v925_v1 }
  0x35   : > { %868 = vmatpush3.bf16.msra.mxu0 %v911_v21 }
  0x36   : > { %869 = vmatprep.subr.bf16.mxu0 %v925_v1 }
  0x39   : > { %870 = vmatpush3.bf16.msra.mxu0 %v912_v22 }
  0x3a   : > { %871 = vmatprep.subr.bf16.mxu0 %v925_v1 }
  0x3d   : > { %872 = vmatpush3.bf16.msra.mxu0 %v913_v23 }
  0x3e   : > { %873 = vmatprep.subr.bf16.mxu0 %v925_v1 }
  0x41   : > { %874 = vmatpush3.bf16.msra.mxu0 %v914_v24 }
  0x42   : > { %875 = vmatprep.subr.bf16.mxu0 %v925_v1 }
  0x45   : > { %876 = vmatpush3.bf16.msra.mxu0 %v915_v33 }
  0x46   : > { %877 = vmatprep.subr.bf16.mxu0 %v925_v1 }
  0x49   : > { %878 = vmatpush3.bf16.msra.mxu0 %v916_v34 }
  0xec   : > { %v420_v26 = vpop.f32.mrf.mxu0 }
  0xed   : > { %v421_v27 = vadd.f32 %v767_v25, %v420_v26 }
  0xee   : > { %v841_v28 = vpop.f32.mrf.mxu0 }
  0xef   : > { %v426_v29 = vmax.f32 %v421_v27, 0.0 }
  0xf0   : > { %v423_v30 = vpop.f32.mrf.mxu0 }
  0xf1   : > { %v427_v31 = vpack.c.bf16 %v426_v29, %v426_v29 }
  0xf2   : > { %v842_v32 = vpop.f32.mrf.mxu0 }
  0xf3   : > { %860 = vmatmul.mubr.bf16.vlgmr.msra.gmra.mxu1 %v427_v31 }
 0x1b3   : > { %v533_v36 = vpop.f32.mrf.mxu1 }
 0x1b4   : > { %v534_v37 = vadd.f32 %v776_v35, %v533_v36 }
 0x1b5   : > { %v861_v38 = vpop.f32.mrf.mxu1 }
 0x1b6   : > { %v539_v39 = vmax.f32 %v534_v37, 0.0 }
 0x1b7   : > { %v536_v40 = vpop.f32.mrf.mxu1 }
 0x1b8   : > { %v540_v41 = vpack.c.bf16 %v539_v39, %v539_v39 }
 0x1b9   : > { %v862_v42 = vpop.f32.mrf.mxu1 }
 0x1ba   : > { %880 = vmatmul.mubr.bf16.vlgmr.msra.gmra.mxu0 %v540_v41 }
 0x27a   : > { %v646_v44 = vpop.f32.mrf.mxu0 }
 0x27b   : > { %v647_v45 = vadd.f32 %v785_v43, %v646_v44 }
 0x27c   : > { %v881_v46 = vpop.f32.mrf.mxu0 }
 0x27d   : > { %652 = vst [vmem:[%s307_s29] sm:$0xff] %v647_v45  ;;  %655 = vmax.xlane.f32.xlu0 %v647_v45 }
 0x27e   : > { %v649_v47 = vpop.f32.mrf.mxu0 }
 0x280   : > { %v882_v48 = vpop.f32.mrf.mxu0 }
 0x306   : > { %v656_v51 = vpop.xlane.xlu0 %655 }
 0x307   : > { %vm657_vm1 = vcmp.eq.f32.partialorder %v647_v45, %v656_v51 }
 0x308   : > { %v658_v52 = vsel %vm657_vm1, %v654_v50, 128 }
 0x309   : > { %v660_v53 = vshra.s32 %v658_v52, 16  ;;  %v659_v55 = vand.u32 65535, %v658_v52 }
 0x30b   : > { %v662_v54 = vcvt.s32.f32 %v660_v53  ;;  %v661_v57 = vcvt.s32.f32 %v659_v55 }
 0x30d   : > { %663 = vmin.xlane.f32.xlu0 %v662_v54 }
 0x396   : > { %v664_v56 = vpop.xlane.xlu0 %663 }
 0x397   : > { %vm665_vm2 = vcmp.eq.f32.partialorder %v662_v54, %v664_v56  ;;  %v670_v59 = vcvt.f32.s32 %v664_v56 }
 0x398   : > { %v666_v58 = vsel %vm665_vm2, %v661_v57, inf }
 0x399   : > { %667 = vmin.xlane.f32.xlu1 %v666_v58  ;;  %v671_v61 = vshll.u32 %v670_v59, 16 }
 0x422   : > { %v668_v60 = vpop.xlane.xlu1 %667 }
 0x423   : > { %v669_v62 = vcvt.f32.s32 %v668_v60 }
 0x425   : > { %v672_v63 = vadd.s32 %v671_v61, %v669_v62 }
 0x427   : > { %674 = vst.msk [vmem:[%s311_s9] sm:$0xff] %vm673_vm3, %v672_v63 }
 0x428 PF: > { %s19_s27 = sadd.s32 1, %s923_s27  }
 0x429   : > { %p16_p4 = scmp.ge.s32.totalorder %s19_s27, 5  }
 0x42b   :  { %18 = sbr.rel (!%p16_p4) target bundleno = 1 (0x1), region = 90 }

</bundles_post_ra>
